<compile_context>
chip_gen: v7x
topology: tpu7x:2x2x1
jax: 0.10.0
libtpu: 0.0.40
codegen_flags: <defaults>
</compile_context>

<pallas_src>
import math
import functools

import jax
import jax.numpy as jnp
from jax import lax
from jax.experimental import pallas as pl
from jax.experimental.pallas import tpu as pltpu


# ----------------------------------------------------------------------------
# Tiling helper: largest multiple of `align` <= target that divides dim.
# ----------------------------------------------------------------------------
def _pick_tile(dim, target, align):
    if dim <= target:
        return dim
    t = (target // align) * align
    while t >= align:
        if dim % t == 0:
            return t
        t -= align
    return dim  # fallback: full extent (always legal for BlockSpec)


# ----------------------------------------------------------------------------
# Linear kernel: out = x @ W + b, tiled over (batch, row-tile, out-col-tile).
# ----------------------------------------------------------------------------
def _linear_kernel(x_ref, w_ref, b_ref, o_ref):
    # x_ref: (1, tm, K)  w_ref: (K, tn)  b_ref: (1, tn)  o_ref: (1, tm, tn)
    acc = jnp.dot(x_ref[0], w_ref[...], preferred_element_type=jnp.float32)
    o_ref[0] = (acc + b_ref[...]).astype(o_ref.dtype)


def _linear(x, w, b, *, tm_target=256, tn_target=512):
    B, T, K = x.shape
    K2, N = w.shape
    assert K == K2
    tm = _pick_tile(T, tm_target, 8)
    tn = _pick_tile(N, tn_target, 128)
    assert T % tm == 0 and N % tn == 0
    b2 = b.reshape(1, N)

    return pl.pallas_call(
        _linear_kernel,
        out_shape=jax.ShapeDtypeStruct((B, T, N), x.dtype),
        grid_spec=pltpu.PrefetchScalarGridSpec(
            num_scalar_prefetch=0,
            grid=(B, T // tm, N // tn),
            in_specs=[
                pl.BlockSpec((1, tm, K), lambda bi, i, j: (bi, i, 0)),   # x tile
                pl.BlockSpec((K, tn), lambda bi, i, j: (0, j)),          # W col-tile
                pl.BlockSpec((1, tn), lambda bi, i, j: (0, j)),          # bias tile
            ],
            out_specs=pl.BlockSpec((1, tm, tn), lambda bi, i, j: (bi, i, j)),
        ),
        compiler_params=pltpu.CompilerParams(
            dimension_semantics=("parallel", "parallel", "parallel")),
    )(x, w, b2)


# ----------------------------------------------------------------------------
# Flash attention kernel (causal, online softmax).
# grid = (B, H, T//tq, T//tk); kv axis last ("arbitrary" / reduction).
# ----------------------------------------------------------------------------
def _flash_attn_kernel(q_ref, k_ref, v_ref, o_ref, m_sc, l_sc, acc_sc,
                       *, scale, tq, tk):
    qi = pl.program_id(2)
    ki = pl.program_id(3)
    nk = pl.num_programs(3)

    @pl.when(ki == 0)
    def _init():
        m_sc[...] = jnp.full(m_sc.shape, -1e30, m_sc.dtype)
        l_sc[...] = jnp.zeros(l_sc.shape, l_sc.dtype)
        acc_sc[...] = jnp.zeros(acc_sc.shape, acc_sc.dtype)

    q_start = qi * tq
    k_start = ki * tk
    # Block-level causal classification (element index ranges).
    overlaps_causal = k_start <= q_start + (tq - 1)      # block has visible entries
    fully_visible = (k_start + (tk - 1)) <= q_start      # strictly below diagonal

    def _scores():
        q = q_ref[0, 0] * scale                           # fold 1/sqrt(hd) into q tile
        k = k_ref[0, 0]
        # QK^T without materializing a transpose: contract head-dim of both operands.
        return lax.dot_general(q, k, (((1,), (1,)), ((), ())),
                               preferred_element_type=jnp.float32)   # (tq, tk)

    def _accumulate(s):
        v = v_ref[0, 0]
        m_prev = m_sc[...]
        m_cur = jnp.max(s, axis=-1, keepdims=True)
        m_new = jnp.maximum(m_prev, m_cur)
        alpha = jnp.exp(m_prev - m_new)
        p = jnp.exp(s - m_new)                            # un-normalized probabilities
        l_sc[...] = alpha * l_sc[...] + jnp.sum(p, axis=-1, keepdims=True)
        acc_sc[...] = alpha * acc_sc[...] + jnp.dot(
            p.astype(v.dtype), v, preferred_element_type=jnp.float32)
        m_sc[...] = m_new

    # Strictly-below-diagonal blocks: no mask work at all.
    @pl.when(jnp.logical_and(overlaps_causal, fully_visible))
    def _below_diag():
        _accumulate(_scores())

    # Diagonal-straddling blocks: apply the causal mask.
    @pl.when(jnp.logical_and(overlaps_causal, jnp.logical_not(fully_visible)))
    def _diag():
        s = _scores()
        row = lax.broadcasted_iota(jnp.int32, (tq, tk), 0) + q_start
        col = lax.broadcasted_iota(jnp.int32, (tq, tk), 1) + k_start
        s = jnp.where(col <= row, s, jnp.float32(-1e30))
        _accumulate(s)

    # Fully-masked blocks (k_start > q_end) are skipped entirely.

    @pl.when(ki == nk - 1)
    def _finalize():
        inv_l = pl.reciprocal(l_sc[...], approx=True)     # EUP slot (free-ish)
        o_ref[0, 0] = (acc_sc[...] * inv_l).astype(o_ref.dtype)


def _flash_attention(q, k, v, *, tq_target=128, tk_target=128):
    B, H, T, hd = q.shape
    scale = 1.0 / math.sqrt(hd)
    tq = _pick_tile(T, tq_target, 8)
    tk = _pick_tile(T, tk_target, 8)
    assert T % tq == 0 and T % tk == 0

    kernel = functools.partial(_flash_attn_kernel, scale=scale, tq=tq, tk=tk)
    return pl.pallas_call(
        kernel,
        out_shape=jax.ShapeDtypeStruct((B, H, T, hd), q.dtype),
        grid_spec=pltpu.PrefetchScalarGridSpec(
            num_scalar_prefetch=0,
            grid=(B, H, T // tq, T // tk),
            in_specs=[
                pl.BlockSpec((1, 1, tq, hd), lambda b, h, qi, ki: (b, h, qi, 0)),
                pl.BlockSpec((1, 1, tk, hd), lambda b, h, qi, ki: (b, h, ki, 0)),
                pl.BlockSpec((1, 1, tk, hd), lambda b, h, qi, ki: (b, h, ki, 0)),
            ],
            out_specs=pl.BlockSpec((1, 1, tq, hd),
                                   lambda b, h, qi, ki: (b, h, qi, 0)),
            scratch_shapes=[
                pltpu.VMEM((tq, 1), jnp.float32),    # running max m
                pltpu.VMEM((tq, 1), jnp.float32),    # running denom l
                pltpu.VMEM((tq, hd), jnp.float32),   # un-normalized output acc
            ],
        ),
        compiler_params=pltpu.CompilerParams(
            dimension_semantics=("parallel", "parallel", "parallel", "arbitrary")),
    )(q, k, v)


# ----------------------------------------------------------------------------
# Full module forward.
# ----------------------------------------------------------------------------
def causal_self_attention(x, w_qkv, b_qkv, w_proj, b_proj, *, n_head):
    """x: (B, T, C). Returns (B, T, C)."""
    B, T, C = x.shape
    H = n_head
    assert C % H == 0
    hd = C // H

    # 1) QKV projection (tiled matmul kernel)
    qkv = _linear(x, w_qkv, b_qkv)                        # (B, T, 3C)

    # 2) split heads (wrapper-side layout plumbing)
    qkv = qkv.reshape(B, T, 3, H, hd)
    q = qkv[:, :, 0].transpose(0, 2, 1, 3)                # (B, H, T, hd)
    k = qkv[:, :, 1].transpose(0, 2, 1, 3)
    v = qkv[:, :, 2].transpose(0, 2, 1, 3)

    # 3) causal flash attention
    y = _flash_attention(q, k, v)                         # (B, H, T, hd)

    # 4) merge heads + output projection (tiled matmul kernel)
    y = y.transpose(0, 2, 1, 3).reshape(B, T, C)
    return _linear(y, w_proj, b_proj)                     # (B, T, C)


# ----------------------------------------------------------------------------
# Pure-JAX reference mirroring the PyTorch forward (eval mode).
# ----------------------------------------------------------------------------
def _reference(x, w_qkv, b_qkv, w_proj, b_proj, n_head):
    B, T, C = x.shape
    hd = C // n_head
    qkv = x @ w_qkv + b_qkv
    q, k, v = jnp.split(qkv, 3, axis=-1)
    q = q.reshape(B, T, n_head, hd).transpose(0, 2, 1, 3)
    k = k.reshape(B, T, n_head, hd).transpose(0, 2, 1, 3)
    v = v.reshape(B, T, n_head, hd).transpose(0, 2, 1, 3)
    att = (q @ k.transpose(0, 1, 3, 2)) * (1.0 / math.sqrt(hd))
    mask = jnp.tril(jnp.ones((T, T), dtype=bool))[None, None]
    att = jnp.where(mask, att, -jnp.inf)
    att = jax.nn.softmax(att, axis=-1)
    y = att @ v
    y = y.transpose(0, 2, 1, 3).reshape(B, T, C)
    return y @ w_proj + b_proj


if __name__ == "__main__":
    # Small config consistent with the module: d_model=32, n_head=4, context=8
    B, T, C, H = 2, 8, 32, 4

    key = jax.random.PRNGKey(0)
    kx, k1, k2, k3, k4 = jax.random.split(key, 5)

    x = jax.random.normal(kx, (B, T, C), dtype=jnp.float32)

    # Deterministic nn.Linear-style init, stored as (in_features, out_features).
    bound = 1.0 / math.sqrt(C)
    w_qkv = jax.random.uniform(k1, (C, 3 * C), jnp.float32, -bound, bound)
    b_qkv = jax.random.uniform(k2, (3 * C,), jnp.float32, -bound, bound)
    w_proj = jax.random.uniform(k3, (C, C), jnp.float32, -bound, bound)
    b_proj = jax.random.uniform(k4, (C,), jnp.float32, -bound, bound)

    fn = jax.jit(functools.partial(causal_self_attention, n_head=H))
    y = jax.block_until_ready(fn(x, w_qkv, b_qkv, w_proj, b_proj))

    y_ref = _reference(x, w_qkv, b_qkv, w_proj, b_proj, H)
    assert y.shape == (B, T, C)
    err = float(jnp.max(jnp.abs(y - y_ref)))
    # Loose-ish tolerance: pl.reciprocal(approx=True) in the softmax finalize.
    assert jnp.allclose(y, y_ref, atol=2e-2, rtol=2e-2), f"max abs err = {err}"

    print("KERNEL_OK")
</pallas_src>

<mosaic_0001>
module attributes {stable_mosaic.version = 11 : i64} {
  func.func @_linear_kernel(%arg0: i32, %arg1: i32, %arg2: i32, %arg3: memref<1x8x32xf32, #tpu.memory_space<vmem>>, %arg4: memref<32x96xf32, #tpu.memory_space<vmem>>, %arg5: memref<1x96xf32, #tpu.memory_space<vmem>>, %arg6: memref<1x8x96xf32, #tpu.memory_space<vmem>>) attributes {dimension_semantics = [#tpu.dimension_semantics<parallel>, #tpu.dimension_semantics<parallel>, #tpu.dimension_semantics<parallel>], iteration_bounds = array<i64: 2, 1, 1>, scalar_prefetch = 0 : i64, scratch_operands = 0 : i64, tpu.core_type = #tpu.core_type<tc>, window_params = [{transform_indices = @transform_0, window_bounds = array<i64: 1, 8, 32>}, {transform_indices = @transform_1, window_bounds = array<i64: 32, 96>}, {transform_indices = @transform_2, window_bounds = array<i64: 1, 96>}, {transform_indices = @transform_3, window_bounds = array<i64: 1, 8, 96>}]} {
    %c0 = arith.constant 0 : index
    %c0_0 = arith.constant 0 : index
    %c0_1 = arith.constant 0 : index
    %0 = vector.load %arg3[%c0, %c0_0, %c0_1] : memref<1x8x32xf32, #tpu.memory_space<vmem>>, vector<1x8x32xf32>
    %1 = vector.shape_cast %0 : vector<1x8x32xf32> to vector<8x32xf32>
    %c0_2 = arith.constant 0 : index
    %c0_3 = arith.constant 0 : index
    %2 = vector.load %arg4[%c0_2, %c0_3] : memref<32x96xf32, #tpu.memory_space<vmem>>, vector<32x96xf32>
    %cst = arith.constant dense<0.000000e+00> : vector<8x96xf32>
    %3 = tpu.matmul %1, %2, %cst {dimension_numbers = #tpu.dot_dimension_numbers<[1], [0], [0], [1], [0, 0, 1, 1], [], []>} : vector<8x32xf32>, vector<32x96xf32>, vector<8x96xf32> -> vector<8x96xf32>
    %c0_4 = arith.constant 0 : index
    %c0_5 = arith.constant 0 : index
    %4 = vector.load %arg5[%c0_4, %c0_5] : memref<1x96xf32, #tpu.memory_space<vmem>>, vector<1x96xf32>
    %5 = vector.broadcast %4 : vector<1x96xf32> to vector<8x96xf32>
    %6 = arith.addf %3, %5 : vector<8x96xf32>
    %c0_6 = arith.constant 0 : index
    %c0_7 = arith.constant 0 : index
    %c0_8 = arith.constant 0 : index
    %7 = vector.load %arg6[%c0_6, %c0_7, %c0_8] : memref<1x8x96xf32, #tpu.memory_space<vmem>>, vector<1x8x96xf32>
    %8 = vector.shape_cast %7 : vector<1x8x96xf32> to vector<8x96xf32>
    %9 = vector.shape_cast %6 : vector<8x96xf32> to vector<1x8x96xf32>
    tpu.vector_store %arg6[%c0_6, %c0_7, %c0_8], %9 {strides = array<i32>} : memref<1x8x96xf32, #tpu.memory_space<vmem>>, vector<1x8x96xf32>,
    return
  }
  func.func @transform_0(%arg0: i32, %arg1: i32, %arg2: i32) -> (i32, i32, i32) {
    %c0_i32 = arith.constant 0 : i32
    %c0_i32_0 = arith.constant 0 : i32
    return %arg0, %arg1, %c0_i32 : i32, i32, i32
  }
  func.func @transform_1(%arg0: i32, %arg1: i32, %arg2: i32) -> (i32, i32) {
    %c0_i32 = arith.constant 0 : i32
    %c0_i32_0 = arith.constant 0 : i32
    return %c0_i32, %arg2 : i32, i32
  }
  func.func @transform_2(%arg0: i32, %arg1: i32, %arg2: i32) -> (i32, i32) {
    %c0_i32 = arith.constant 0 : i32
    %c0_i32_0 = arith.constant 0 : i32
    return %c0_i32, %arg2 : i32, i32
  }
  func.func @transform_3(%arg0: i32, %arg1: i32, %arg2: i32) -> (i32, i32, i32) {
    %c0_i32 = arith.constant 0 : i32
    return %arg0, %arg1, %arg2 : i32, i32, i32
  }
}

module attributes {stable_mosaic.version = 11 : i64} {
  func.func @_flash_attn_kernel(%arg0: i32, %arg1: i32, %arg2: i32, %arg3: i32, %arg4: memref<1x1x8x8xf32, #tpu.memory_space<vmem>>, %arg5: memref<1x1x8x8xf32, #tpu.memory_space<vmem>>, %arg6: memref<1x1x8x8xf32, #tpu.memory_space<vmem>>, %arg7: memref<1x1x8x8xf32, #tpu.memory_space<vmem>>, %arg8: memref<8x1xf32, #tpu.memory_space<vmem>>, %arg9: memref<8x1xf32, #tpu.memory_space<vmem>>, %arg10: memref<8x8xf32, #tpu.memory_space<vmem>>) attributes {dimension_semantics = [#tpu.dimension_semantics<parallel>, #tpu.dimension_semantics<parallel>, #tpu.dimension_semantics<parallel>, #tpu.dimension_semantics<arbitrary>], iteration_bounds = array<i64: 2, 4, 1, 1>, scalar_prefetch = 0 : i64, scratch_operands = 3 : i64, tpu.core_type = #tpu.core_type<tc>, window_params = [{transform_indices = @transform_0, window_bounds = array<i64: 1, 1, 8, 8>}, {transform_indices = @transform_1, window_bounds = array<i64: 1, 1, 8, 8>}, {transform_indices = @transform_2, window_bounds = array<i64: 1, 1, 8, 8>}, {transform_indices = @transform_3, window_bounds = array<i64: 1, 1, 8, 8>}]} {
    %c0_i32 = arith.constant 0 : i32
    %0 = arith.cmpi eq, %arg3, %c0_i32 : i32
    %1 = arith.extui %0 : i1 to i32
    %c0_i32_0 = arith.constant 0 : i32
    %2 = arith.cmpi ne, %1, %c0_i32_0 : i32
    scf.if %2 {
      %cst = arith.constant -1.000000e+30 : f32
      %19 = vector.broadcast %cst : f32 to vector<8x1xf32>
      %c0 = arith.constant 0 : index
      %c0_7 = arith.constant 0 : index
      %20 = vector.load %arg8[%c0, %c0_7] : memref<8x1xf32, #tpu.memory_space<vmem>>, vector<8x1xf32>
      tpu.vector_store %arg8[%c0, %c0_7], %19 {strides = array<i32>} : memref<8x1xf32, #tpu.memory_space<vmem>>, vector<8x1xf32>,
      %cst_8 = arith.constant 0.000000e+00 : f32
      %21 = vector.broadcast %cst_8 : f32 to vector<8x1xf32>
      %c0_9 = arith.constant 0 : index
      %c0_10 = arith.constant 0 : index
      %22 = vector.load %arg9[%c0_9, %c0_10] : memref<8x1xf32, #tpu.memory_space<vmem>>, vector<8x1xf32>
      tpu.vector_store %arg9[%c0_9, %c0_10], %21 {strides = array<i32>} : memref<8x1xf32, #tpu.memory_space<vmem>>, vector<8x1xf32>,
      %cst_11 = arith.constant 0.000000e+00 : f32
      %23 = vector.broadcast %cst_11 : f32 to vector<8x8xf32>
      %c0_12 = arith.constant 0 : index
      %c0_13 = arith.constant 0 : index
      %24 = vector.load %arg10[%c0_12, %c0_13] : memref<8x8xf32, #tpu.memory_space<vmem>>, vector<8x8xf32>
      tpu.vector_store %arg10[%c0_12, %c0_13], %23 {strides = array<i32>} : memref<8x8xf32, #tpu.memory_space<vmem>>, vector<8x8xf32>,
    } else {
    }
    %c8_i32 = arith.constant 8 : i32
    %3 = arith.muli %arg2, %c8_i32 : i32
    %c8_i32_1 = arith.constant 8 : i32
    %4 = arith.muli %arg3, %c8_i32_1 : i32
    %c7_i32 = arith.constant 7 : i32
    %5 = arith.addi %3, %c7_i32 : i32
    %6 = arith.cmpi sle, %4, %5 : i32
    %c7_i32_2 = arith.constant 7 : i32
    %7 = arith.addi %4, %c7_i32_2 : i32
    %8 = arith.cmpi sle, %7, %3 : i32
    %9 = arith.andi %6, %8 : i1
    %10 = arith.extui %9 : i1 to i32
    %c0_i32_3 = arith.constant 0 : i32
    %11 = arith.cmpi ne, %10, %c0_i32_3 : i32
    scf.if %11 {
      %c0 = arith.constant 0 : index
      %c0_7 = arith.constant 0 : index
      %c0_8 = arith.constant 0 : index
      %c0_9 = arith.constant 0 : index
      %19 = vector.load %arg4[%c0, %c0_7, %c0_8, %c0_9] : memref<1x1x8x8xf32, #tpu.memory_space<vmem>>, vector<1x1x8x8xf32>
      %20 = vector.shape_cast %19 : vector<1x1x8x8xf32> to vector<8x8xf32>
      %cst = arith.constant 0.353553385 : f32
      %21 = vector.broadcast %cst : f32 to vector<8x8xf32>
      %22 = arith.mulf %20, %21 : vector<8x8xf32>
      %c0_10 = arith.constant 0 : index
      %c0_11 = arith.constant 0 : index
      %c0_12 = arith.constant 0 : index
      %c0_13 = arith.constant 0 : index
      %23 = vector.load %arg5[%c0_10, %c0_11, %c0_12, %c0_13] : memref<1x1x8x8xf32, #tpu.memory_space<vmem>>, vector<1x1x8x8xf32>
      %24 = vector.shape_cast %23 : vector<1x1x8x8xf32> to vector<8x8xf32>
      %cst_14 = arith.constant dense<0.000000e+00> : vector<8x8xf32>
      %25 = tpu.matmul %22, %24, %cst_14 {dimension_numbers = #tpu.dot_dimension_numbers<[1], [1], [0], [0], [0, 0, 1, 0], [], []>} : vector<8x8xf32>, vector<8x8xf32>, vector<8x8xf32> -> vector<8x8xf32>
      %c0_15 = arith.constant 0 : index
      %c0_16 = arith.constant 0 : index
      %c0_17 = arith.constant 0 : index
      %c0_18 = arith.constant 0 : index
      %26 = vector.load %arg6[%c0_15, %c0_16, %c0_17, %c0_18] : memref<1x1x8x8xf32, #tpu.memory_space<vmem>>, vector<1x1x8x8xf32>
      %27 = vector.shape_cast %26 : vector<1x1x8x8xf32> to vector<8x8xf32>
      %c0_19 = arith.constant 0 : index
      %c0_20 = arith.constant 0 : index
      %28 = vector.load %arg8[%c0_19, %c0_20] : memref<8x1xf32, #tpu.memory_space<vmem>>, vector<8x1xf32>
      %cst_21 = arith.constant dense<0xFF800000> : vector<8xf32>
      %29 = vector.multi_reduction <maximumf>, %25, %cst_21 [1] : vector<8x8xf32> to vector<8xf32>
      %30 = vector.shape_cast %29 : vector<8xf32> to vector<8x1xf32>
      %31 = arith.maximumf %28, %30 : vector<8x1xf32>
      %32 = arith.subf %28, %31 : vector<8x1xf32>
      %33 = math.exp %32 : vector<8x1xf32>
      %34 = vector.broadcast %31 : vector<8x1xf32> to vector<8x8xf32>
      %35 = arith.subf %25, %34 : vector<8x8xf32>
      %36 = math.exp %35 : vector<8x8xf32>
      %c0_22 = arith.constant 0 : index
      %c0_23 = arith.constant 0 : index
      %37 = vector.load %arg9[%c0_22, %c0_23] : memref<8x1xf32, #tpu.memory_space<vmem>>, vector<8x1xf32>
      %38 = arith.mulf %33, %37 : vector<8x1xf32>
      %cst_24 = arith.constant dense<0.000000e+00> : vector<8xf32>
      %39 = vector.multi_reduction <add>, %36, %cst_24 [1] : vector<8x8xf32> to vector<8xf32>
      %40 = vector.shape_cast %39 : vector<8xf32> to vector<8x1xf32>
      %41 = arith.addf %38, %40 : vector<8x1xf32>
      %c0_25 = arith.constant 0 : index
      %c0_26 = arith.constant 0 : index
      %42 = vector.load %arg9[%c0_25, %c0_26] : memref<8x1xf32, #tpu.memory_space<vmem>>, vector<8x1xf32>
      tpu.vector_store %arg9[%c0_25, %c0_26], %41 {strides = array<i32>} : memref<8x1xf32, #tpu.memory_space<vmem>>, vector<8x1xf32>,
      %c0_27 = arith.constant 0 : index
      %c0_28 = arith.constant 0 : index
      %43 = vector.load %arg10[%c0_27, %c0_28] : memref<8x8xf32, #tpu.memory_space<vmem>>, vector<8x8xf32>
      %44 = vector.broadcast %33 : vector<8x1xf32> to vector<8x8xf32>
      %45 = arith.mulf %44, %43 : vector<8x8xf32>
      %cst_29 = arith.constant dense<0.000000e+00> : vector<8x8xf32>
      %46 = tpu.matmul %36, %27, %cst_29 {dimension_numbers = #tpu.dot_dimension_numbers<[1], [0], [0], [1], [0, 0, 1, 1], [], []>} : vector<8x8xf32>, vector<8x8xf32>, vector<8x8xf32> -> vector<8x8xf32>
      %47 = arith.addf %45, %46 : vector<8x8xf32>
      %c0_30 = arith.constant 0 : index
      %c0_31 = arith.constant 0 : index
      %48 = vector.load %arg10[%c0_30, %c0_31] : memref<8x8xf32, #tpu.memory_space<vmem>>, vector<8x8xf32>
      tpu.vector_store %arg10[%c0_30, %c0_31], %47 {strides = array<i32>} : memref<8x8xf32, #tpu.memory_space<vmem>>, vector<8x8xf32>,
      %c0_32 = arith.constant 0 : index
      %c0_33 = arith.constant 0 : index
      %49 = vector.load %arg8[%c0_32, %c0_33] : memref<8x1xf32, #tpu.memory_space<vmem>>, vector<8x1xf32>
      tpu.vector_store %arg8[%c0_32, %c0_33], %31 {strides = array<i32>} : memref<8x1xf32, #tpu.memory_space<vmem>>, vector<8x1xf32>,
    } else {
    }
    %true = arith.constant true
    %12 = arith.xori %8, %true : i1
    %13 = arith.andi %6, %12 : i1
    %14 = arith.extui %13 : i1 to i32
    %c0_i32_4 = arith.constant 0 : i32
    %15 = arith.cmpi ne, %14, %c0_i32_4 : i32
    scf.if %15 {
      %c0 = arith.constant 0 : index
      %c0_7 = arith.constant 0 : index
      %c0_8 = arith.constant 0 : index
      %c0_9 = arith.constant 0 : index
      %19 = vector.load %arg4[%c0, %c0_7, %c0_8, %c0_9] : memref<1x1x8x8xf32, #tpu.memory_space<vmem>>, vector<1x1x8x8xf32>
      %20 = vector.shape_cast %19 : vector<1x1x8x8xf32> to vector<8x8xf32>
      %cst = arith.constant 0.353553385 : f32
      %21 = vector.broadcast %cst : f32 to vector<8x8xf32>
      %22 = arith.mulf %20, %21 : vector<8x8xf32>
      %c0_10 = arith.constant 0 : index
      %c0_11 = arith.constant 0 : index
      %c0_12 = arith.constant 0 : index
      %c0_13 = arith.constant 0 : index
      %23 = vector.load %arg5[%c0_10, %c0_11, %c0_12, %c0_13] : memref<1x1x8x8xf32, #tpu.memory_space<vmem>>, vector<1x1x8x8xf32>
      %24 = vector.shape_cast %23 : vector<1x1x8x8xf32> to vector<8x8xf32>
      %cst_14 = arith.constant dense<0.000000e+00> : vector<8x8xf32>
      %25 = tpu.matmul %22, %24, %cst_14 {dimension_numbers = #tpu.dot_dimension_numbers<[1], [1], [0], [0], [0, 0, 1, 0], [], []>} : vector<8x8xf32>, vector<8x8xf32>, vector<8x8xf32> -> vector<8x8xf32>
      %26 = tpu.iota {dimensions = array<i32: 0>} : vector<8x8xi32>
      %27 = vector.broadcast %3 : i32 to vector<8x8xi32>
      %28 = arith.addi %26, %27 : vector<8x8xi32>
      %29 = tpu.iota {dimensions = array<i32: 1>} : vector<8x8xi32>
      %30 = vector.broadcast %4 : i32 to vector<8x8xi32>
      %31 = arith.addi %29, %30 : vector<8x8xi32>
      %32 = arith.cmpi sle, %31, %28 : vector<8x8xi32>
      %cst_15 = arith.constant -1.000000e+30 : f32
      %33 = vector.broadcast %cst_15 : f32 to vector<8x8xf32>
      %34 = arith.select %32, %25, %33 : vector<8x8xi1>, vector<8x8xf32>
      %c0_16 = arith.constant 0 : index
      %c0_17 = arith.constant 0 : index
      %c0_18 = arith.constant 0 : index
      %c0_19 = arith.constant 0 : index
      %35 = vector.load %arg6[%c0_16, %c0_17, %c0_18, %c0_19] : memref<1x1x8x8xf32, #tpu.memory_space<vmem>>, vector<1x1x8x8xf32>
      %36 = vector.shape_cast %35 : vector<1x1x8x8xf32> to vector<8x8xf32>
      %c0_20 = arith.constant 0 : index
      %c0_21 = arith.constant 0 : index
      %37 = vector.load %arg8[%c0_20, %c0_21] : memref<8x1xf32, #tpu.memory_space<vmem>>, vector<8x1xf32>
      %cst_22 = arith.constant dense<0xFF800000> : vector<8xf32>
      %38 = vector.multi_reduction <maximumf>, %34, %cst_22 [1] : vector<8x8xf32> to vector<8xf32>
      %39 = vector.shape_cast %38 : vector<8xf32> to vector<8x1xf32>
      %40 = arith.maximumf %37, %39 : vector<8x1xf32>
      %41 = arith.subf %37, %40 : vector<8x1xf32>
      %42 = math.exp %41 : vector<8x1xf32>
      %43 = vector.broadcast %40 : vector<8x1xf32> to vector<8x8xf32>
      %44 = arith.subf %34, %43 : vector<8x8xf32>
      %45 = math.exp %44 : vector<8x8xf32>
      %c0_23 = arith.constant 0 : index
      %c0_24 = arith.constant 0 : index
      %46 = vector.load %arg9[%c0_23, %c0_24] : memref<8x1xf32, #tpu.memory_space<vmem>>, vector<8x1xf32>
      %47 = arith.mulf %42, %46 : vector<8x1xf32>
      %cst_25 = arith.constant dense<0.000000e+00> : vector<8xf32>
      %48 = vector.multi_reduction <add>, %45, %cst_25 [1] : vector<8x8xf32> to vector<8xf32>
      %49 = vector.shape_cast %48 : vector<8xf32> to vector<8x1xf32>
      %50 = arith.addf %47, %49 : vector<8x1xf32>
      %c0_26 = arith.constant 0 : index
      %c0_27 = arith.constant 0 : index
      %51 = vector.load %arg9[%c0_26, %c0_27] : memref<8x1xf32, #tpu.memory_space<vmem>>, vector<8x1xf32>
      tpu.vector_store %arg9[%c0_26, %c0_27], %50 {strides = array<i32>} : memref<8x1xf32, #tpu.memory_space<vmem>>, vector<8x1xf32>,
      %c0_28 = arith.constant 0 : index
      %c0_29 = arith.constant 0 : index
      %52 = vector.load %arg10[%c0_28, %c0_29] : memref<8x8xf32, #tpu.memory_space<vmem>>, vector<8x8xf32>
      %53 = vector.broadcast %42 : vector<8x1xf32> to vector<8x8xf32>
      %54 = arith.mulf %53, %52 : vector<8x8xf32>
      %cst_30 = arith.constant dense<0.000000e+00> : vector<8x8xf32>
      %55 = tpu.matmul %45, %36, %cst_30 {dimension_numbers = #tpu.dot_dimension_numbers<[1], [0], [0], [1], [0, 0, 1, 1], [], []>} : vector<8x8xf32>, vector<8x8xf32>, vector<8x8xf32> -> vector<8x8xf32>
      %56 = arith.addf %54, %55 : vector<8x8xf32>
      %c0_31 = arith.constant 0 : index
      %c0_32 = arith.constant 0 : index
      %57 = vector.load %arg10[%c0_31, %c0_32] : memref<8x8xf32, #tpu.memory_space<vmem>>, vector<8x8xf32>
      tpu.vector_store %arg10[%c0_31, %c0_32], %56 {strides = array<i32>} : memref<8x8xf32, #tpu.memory_space<vmem>>, vector<8x8xf32>,
      %c0_33 = arith.constant 0 : index
      %c0_34 = arith.constant 0 : index
      %58 = vector.load %arg8[%c0_33, %c0_34] : memref<8x1xf32, #tpu.memory_space<vmem>>, vector<8x1xf32>
      tpu.vector_store %arg8[%c0_33, %c0_34], %40 {strides = array<i32>} : memref<8x1xf32, #tpu.memory_space<vmem>>, vector<8x1xf32>,
    } else {
    }
    %c0_i32_5 = arith.constant 0 : i32
    %16 = arith.cmpi eq, %arg3, %c0_i32_5 : i32
    %17 = arith.extui %16 : i1 to i32
    %c0_i32_6 = arith.constant 0 : i32
    %18 = arith.cmpi ne, %17, %c0_i32_6 : i32
    scf.if %18 {
      %c0 = arith.constant 0 : index
      %c0_7 = arith.constant 0 : index
      %19 = vector.load %arg9[%c0, %c0_7] : memref<8x1xf32, #tpu.memory_space<vmem>>, vector<8x1xf32>
      %20 = tpu.reciprocal %19 {approx = true} : vector<8x1xf32> -> vector<8x1xf32>
      %c0_8 = arith.constant 0 : index
      %c0_9 = arith.constant 0 : index
      %21 = vector.load %arg10[%c0_8, %c0_9] : memref<8x8xf32, #tpu.memory_space<vmem>>, vector<8x8xf32>
      %22 = vector.broadcast %20 : vector<8x1xf32> to vector<8x8xf32>
      %23 = arith.mulf %21, %22 : vector<8x8xf32>
      %c0_10 = arith.constant 0 : index
      %c0_11 = arith.constant 0 : index
      %c0_12 = arith.constant 0 : index
      %c0_13 = arith.constant 0 : index
      %24 = vector.load %arg7[%c0_10, %c0_11, %c0_12, %c0_13] : memref<1x1x8x8xf32, #tpu.memory_space<vmem>>, vector<1x1x8x8xf32>
      %25 = vector.shape_cast %24 : vector<1x1x8x8xf32> to vector<8x8xf32>
      %26 = vector.shape_cast %23 : vector<8x8xf32> to vector<1x1x8x8xf32>
      tpu.vector_store %arg7[%c0_10, %c0_11, %c0_12, %c0_13], %26 {strides = array<i32>} : memref<1x1x8x8xf32, #tpu.memory_space<vmem>>, vector<1x1x8x8xf32>,
    } else {
    }
    return
  }
  func.func @transform_0(%arg0: i32, %arg1: i32, %arg2: i32, %arg3: i32) -> (i32, i32, i32, i32) {
    %c0_i32 = arith.constant 0 : i32
    %c0_i32_0 = arith.constant 0 : i32
    return %arg0, %arg1, %arg2, %c0_i32 : i32, i32, i32, i32
  }
  func.func @transform_1(%arg0: i32, %arg1: i32, %arg2: i32, %arg3: i32) -> (i32, i32, i32, i32) {
    %c0_i32 = arith.constant 0 : i32
    %c0_i32_0 = arith.constant 0 : i32
    return %arg0, %arg1, %arg3, %c0_i32 : i32, i32, i32, i32
  }
  func.func @transform_2(%arg0: i32, %arg1: i32, %arg2: i32, %arg3: i32) -> (i32, i32, i32, i32) {
    %c0_i32 = arith.constant 0 : i32
    %c0_i32_0 = arith.constant 0 : i32
    return %arg0, %arg1, %arg3, %c0_i32 : i32, i32, i32, i32
  }
  func.func @transform_3(%arg0: i32, %arg1: i32, %arg2: i32, %arg3: i32) -> (i32, i32, i32, i32) {
    %c0_i32 = arith.constant 0 : i32
    %c0_i32_0 = arith.constant 0 : i32
    return %arg0, %arg1, %arg2, %c0_i32 : i32, i32, i32, i32
  }
}

module attributes {stable_mosaic.version = 11 : i64} {
  func.func @_linear_kernel(%arg0: i32, %arg1: i32, %arg2: i32, %arg3: memref<1x8x32xf32, #tpu.memory_space<vmem>>, %arg4: memref<32x32xf32, #tpu.memory_space<vmem>>, %arg5: memref<1x32xf32, #tpu.memory_space<vmem>>, %arg6: memref<1x8x32xf32, #tpu.memory_space<vmem>>) attributes {dimension_semantics = [#tpu.dimension_semantics<parallel>, #tpu.dimension_semantics<parallel>, #tpu.dimension_semantics<parallel>], iteration_bounds = array<i64: 2, 1, 1>, scalar_prefetch = 0 : i64, scratch_operands = 0 : i64, tpu.core_type = #tpu.core_type<tc>, window_params = [{transform_indices = @transform_0, window_bounds = array<i64: 1, 8, 32>}, {transform_indices = @transform_1, window_bounds = array<i64: 32, 32>}, {transform_indices = @transform_2, window_bounds = array<i64: 1, 32>}, {transform_indices = @transform_3, window_bounds = array<i64: 1, 8, 32>}]} {
    %c0 = arith.constant 0 : index
    %c0_0 = arith.constant 0 : index
    %c0_1 = arith.constant 0 : index
    %0 = vector.load %arg3[%c0, %c0_0, %c0_1] : memref<1x8x32xf32, #tpu.memory_space<vmem>>, vector<1x8x32xf32>
    %1 = vector.shape_cast %0 : vector<1x8x32xf32> to vector<8x32xf32>
    %c0_2 = arith.constant 0 : index
    %c0_3 = arith.constant 0 : index
    %2 = vector.load %arg4[%c0_2, %c0_3] : memref<32x32xf32, #tpu.memory_space<vmem>>, vector<32x32xf32>
    %cst = arith.constant dense<0.000000e+00> : vector<8x32xf32>
    %3 = tpu.matmul %1, %2, %cst {dimension_numbers = #tpu.dot_dimension_numbers<[1], [0], [0], [1], [0, 0, 1, 1], [], []>} : vector<8x32xf32>, vector<32x32xf32>, vector<8x32xf32> -> vector<8x32xf32>
    %c0_4 = arith.constant 0 : index
    %c0_5 = arith.constant 0 : index
    %4 = vector.load %arg5[%c0_4, %c0_5] : memref<1x32xf32, #tpu.memory_space<vmem>>, vector<1x32xf32>
    %5 = vector.broadcast %4 : vector<1x32xf32> to vector<8x32xf32>
    %6 = arith.addf %3, %5 : vector<8x32xf32>
    %c0_6 = arith.constant 0 : index
    %c0_7 = arith.constant 0 : index
    %c0_8 = arith.constant 0 : index
    %7 = vector.load %arg6[%c0_6, %c0_7, %c0_8] : memref<1x8x32xf32, #tpu.memory_space<vmem>>, vector<1x8x32xf32>
    %8 = vector.shape_cast %7 : vector<1x8x32xf32> to vector<8x32xf32>
    %9 = vector.shape_cast %6 : vector<8x32xf32> to vector<1x8x32xf32>
    tpu.vector_store %arg6[%c0_6, %c0_7, %c0_8], %9 {strides = array<i32>} : memref<1x8x32xf32, #tpu.memory_space<vmem>>, vector<1x8x32xf32>,
    return
  }
  func.func @transform_0(%arg0: i32, %arg1: i32, %arg2: i32) -> (i32, i32, i32) {
    %c0_i32 = arith.constant 0 : i32
    %c0_i32_0 = arith.constant 0 : i32
    return %arg0, %arg1, %c0_i32 : i32, i32, i32
  }
  func.func @transform_1(%arg0: i32, %arg1: i32, %arg2: i32) -> (i32, i32) {
    %c0_i32 = arith.constant 0 : i32
    %c0_i32_0 = arith.constant 0 : i32
    return %c0_i32, %arg2 : i32, i32
  }
  func.func @transform_2(%arg0: i32, %arg1: i32, %arg2: i32) -> (i32, i32) {
    %c0_i32 = arith.constant 0 : i32
    %c0_i32_0 = arith.constant 0 : i32
    return %c0_i32, %arg2 : i32, i32
  }
  func.func @transform_3(%arg0: i32, %arg1: i32, %arg2: i32) -> (i32, i32, i32) {
    %c0_i32 = arith.constant 0 : i32
    return %arg0, %arg1, %arg2 : i32, i32, i32
  }
}

</mosaic_0001>

<bundles_post_ra>
// kernel: causal_self_attention.3
= control target key start
LH: loop header
LB: loop body
LE: loop exit
PB: predicated region body
PF: predicated region fallthrough
CT: control target
= control target key end

     0   :  { %8 = vsyncpa [#allocation3], 0  ;;  %s877_s0 = inlined_call_operand.hbm [shape: f32[2,8,32], index: 0, kind: input, shape index: {}]   ;;  %s878_s1 = inlined_call_operand.hbm [shape: f32[32,96], index: 1, kind: input, shape index: {}]   ;;  %s879_s2 = inlined_call_operand.vmem [shape: f32[1,96], index: 2, kind: input, shape index: {}]   ;;  %s880_s3 = inlined_call_operand.vmem [shape: f32[2,8,96], index: 3, kind: output, shape index: {}]  }
   0x1   :  { %10 = vsyncpa [#allocation3 + $0x1], 0 }
   0x2   :  { %11 = vsyncpa [#allocation5], 0  ;;  %s719_s12 = smov 0   ;;  %s721_s13 = smov 0  }
   0x3   :  { %s723_s14 = smov 0   ;;  %s725_s15 = smov 0  }
   0x4   :  { %s727_s16 = smov 0   ;;  %s729_s17 = smov 0  }
   0x5 LB: > { %s469_s18 = sadd.s32 4294967295, %s690_s17   ;;  %p58_p0 = scmp.ne.s32.totalorder %s674_s13, %s670_s12  ;;  %s690_s17 = sphi %s729_s17, %s17_s17   ;;  %s686_s16 = sphi %s727_s16, %s897_s16   ;;  %s682_s15 = sphi %s725_s15, %s896_s15   ;;  %s678_s14 = sphi %s723_s14, %s895_s14   ;;  %s674_s13 = sphi %s721_s13, %s894_s13   ;;  %s670_s12 = sphi %s719_s12, %s893_s12  }
   0x6   : > { %p749_p1 = scmp.eq.s32.totalorder %s469_s18, 0  ;;  %p471_p2 = scmp.ge.s32.totalorder %s690_s17, 1 }
   0x7   : > { %p151_p3 = scmp.lt.s32.totalorder %s690_s17, 3  ;;  %s692_s22 = smov [#allocation4]  }
   0x8   : > { %s885_s19 = scalar_select %p749_p1, 1, 0 }
   0x9   : > { %p757_p4 = por %p749_p1, %p58_p0  ;;  %p761_p5 = pnand %p471_p2, %p151_p3 }
   0xa   : > { %s165_s23 = sshll.u32 %s692_s22, 4  ;;  %s36_s25 = sadd.s32 1, %s686_s16  ;;  %s166_s23 = int_to_ptr.vmem [resolvable:$true] %s165_s23 }
   0xb   : > { %s886_s20 = scalar_select %p757_p4, 1, 0 }
   0xc   : > { %s887_s21 = scalar_select %p761_p5, 1, 0 }
   0xd   : > { %p513_p6 = pneg %p761_p5  ;;  %s578_s28 = scalar_lea.hbm %s878_s1, 512 }
   0xe   : > { %p579_p8 = scmp.ne.s32.totalorder %s878_s1, %s578_s28  ;;  %p585_p12 = scmp.lt.u32.totalorder %s578_s28, %s878_s1 }
   0xf   : > { %p769_p7 = pnand %p513_p6, %p749_p1 }
  0x11   : > { %p580_p9 = pneg %p769_p7 }
  0x13   : > { %p581_p10 = pnand %p580_p9, %p579_p8 }
  0x15   : > { %p582_p11 = pneg %p581_p10 }
  0x17   : > { %p587_p13 = pnand %p585_p12, %p582_p11 }
  0x19   : > { %590 = shalt.err (!%p587_p13)
}
  0x1a   : > { %s591_s6 = scalar_lea.vmem %s166_s23, 512  ;;  %p599_p6 = scmp.lt.s32.totalorder %s166_s23, %s166_s23 }
  0x1b   : > { %p592_p0 = scmp.ne.s32.totalorder %s166_s23, %s591_s6  ;;  %p600_p1 = scmp.lt.s32.totalorder %s591_s6, %s591_s6 }
  0x1d   : > { %p594_p2 = pnand %p592_p0, %p580_p9  ;;  %p601_p4 = por %p600_p1, %p599_p6 }
  0x1f   : > { %p595_p3 = pneg %p594_p2 }
  0x21   : > { %p602_p5 = pnand %p601_p4, %p595_p3 }
  0x23   : > { %605 = shalt.err (!%p602_p5)
}
  0x24   : > { %s693_s7 = smov 128   ;;  %s694_s8 = smov 8  }
  0x25   : > { %516 = dma.hbm_to_vmem [thread:$0]  (!%p769_p7), %s878_s1, 512, %s166_s23, [#allocation5], %s693_s7, %s693_s7, %s694_s8  }
  0x26   : > { %p38_p1 = scmp.ge.s32.totalorder %s36_s25, 2  ;;  %s45_s11 = sadd.s32 1, %s678_s14 }
  0x27   : > { %p52_p4 = scmp.ne.s32.totalorder %s678_s14, %s674_s13  ;;  %p53_p5 = scmp.eq.s32.totalorder %s690_s17, 0 }
  0x28   : > { %s899_s25 = smov (%p38_p1, %s36_s25), 0  ;;  %p522_p9 = scmp.lt.s32.totalorder %s690_s17, 2 }
  0x29   : > { %p54_p8 = por %p53_p5, %p52_p4  ;;  %s40_s12 = ssub.s32 %s686_s16, %s899_s25 }
  0x2a   : > { %s185_s18 = sand.u32 1, %s678_s14   ;;  %p43_p10 = scmp.eq.s32.totalorder %s40_s12, 0 }
  0x2b   : > { %s475_s22 = sshll.u32 %s185_s18, 3  ;;  %s476_s26 = sshll.u32 %s686_s16, 7 }
  0x2c   : > { %s802_s27 = scalar_select %p43_p10, %s678_s14, %s45_s11  }
  0x2d   : > { %s807_s23 = scalar_lea.hbm %s877_s0, %s476_s26  ;;  %s189_s29 = scalar_lea.vmem [#allocation2], %s475_s22 }
  0x2e   : > { %s197_s30 = sshll.u32 %s189_s29, 4  ;;  %p809_p7 = pnand %p522_p9, %p54_p8  ;;  %s813_s30 = int_to_ptr.vmem [resolvable:$true] %s197_s30 }
  0x2f   : > { %s186_s5 = scalar_lea.sflag [#allocation3], %s185_s18  ;;  %s606_s6 = scalar_lea.hbm %s807_s23, 128 }
  0x30   : > { %p607_p11 = scmp.ne.s32.totalorder %s807_s23, %s606_s6  ;;  %p608_p12 = pneg %p809_p7 }
  0x31   : > { %s611_s9 = scalar_lea.hbm %s877_s0, 256  ;;  %p612_p2 = scmp.lt.u32.totalorder %s807_s23, %s877_s0 }
  0x32   : > { %p609_p13 = pnand %p608_p12, %p607_p11  ;;  %p613_p3 = scmp.lt.u32.totalorder %s611_s9, %s606_s6 }
  0x33   : > { %p615_p1 = scmp.lt.u32.totalorder %s606_s6, %s807_s23 }
  0x34   : > { %p610_p0 = pneg %p609_p13  ;;  %p614_p6 = por %p613_p3, %p612_p2 }
  0x36   : > { %p616_p4 = por %p615_p1, %p614_p6 }
  0x38   : > { %p617_p5 = pnand %p616_p4, %p610_p0 }
  0x3a   : > { %620 = shalt.err (!%p617_p5)
}
  0x3b   : > { %s621_s12 = scalar_lea.vmem %s813_s30, 128  ;;  %s695_s18 = smov [#allocation2]  }
  0x3c   : > { %p622_p8 = scmp.ne.s32.totalorder %s813_s30, %s621_s12  ;;  %s626_s22 = sshll.u32 %s695_s18, 4  ;;  %s627_s22 = int_to_ptr.vmem [resolvable:$false] %s626_s22 }
  0x3d   : > { %s628_s26 = scalar_lea.vmem %s627_s22, 256  ;;  %p629_p11 = scmp.lt.s32.totalorder %s813_s30, %s627_s22 }
  0x3e   : > { %p624_p9 = pnand %p622_p8, %p608_p12  ;;  %p630_p13 = scmp.lt.s32.totalorder %s628_s26, %s621_s12 }
  0x40   : > { %p625_p10 = pneg %p624_p9  ;;  %p631_p2 = por %p630_p13, %p629_p11 }
  0x42   : > { %p632_p3 = pnand %p631_p2, %p625_p10 }
  0x44   : > { %635 = shalt.err (!%p632_p3)
}
  0x45   : > { %520 = dma.hbm_to_vmem [thread:$0]  (!%p809_p7), %s807_s23, 128, %s813_s30, %s186_s5  }
  0x46   : > { %p890_p0 = scmp.ne.s32.totalorder %s887_s21, 0 }
  0x47   : > { %s208_s24 = sand.u32 (!%p890_p0), 1, %s674_s13   ;;  %p891_p12 = scmp.ne.s32.totalorder (!%p890_p0), %s886_s20, 0 }
  0x48   : > { %206 = sbr.rel (%p890_p0) target bundleno = 309 (0x135), region = 32  ;;  %s478_s28 = sshll.u32 (!%p890_p0), %s208_s24, 3 }
  0x49   : > { %s209_s29 = scalar_lea.sflag (!%p890_p0), [#allocation3], %s208_s24  ;;  %s212_s6 = scalar_lea.vmem (!%p890_p0), [#allocation2], %s478_s28 }
  0x4f   : > { %661 = dma.done.wait (%p891_p12), %s209_s29, 128  }
  0x50   : > { %663 = vsyncadd (%p891_p12), %s209_s29, 4294967168  ;;  %p892_p6 = scmp.ne.s32.totalorder %s885_s19, 0 }
  0x52   : > { %665 = dma.done.wait (%p892_p6), [#allocation5], 512  }
  0x53   : > { %667 = vsyncadd (%p892_p6), [#allocation5], 4294966784  ;;  %v696_v0 = vmov 0.0|0.0   ;;  %vm697_vm0 = vmmov 0   ;;  %v698_v1 = vmov 0.0   ;;  %v261_v2 = vld [vmem:[#allocation4] sm:$0xff] }
  0x54   : > { %501 = vmatprep.subr.bf16.mxu0 %v696_v0  ;;  %498 = vmatprep.mubr.msk.f32.mxu0 %vm697_vm0, %v698_v1  ;;  %v262_v3 = vld [vmem:[#allocation4 + $0x8] sm:$0xff]  ;;  %v263_v4 = vld [vmem:[#allocation4 + $0x10] sm:$0xff]  ;;  %v264_v6 = vld [vmem:[#allocation4 + $0x18] sm:$0xff]  ;;  %vm272_vm1 = vcmask 261120   ;;  %p250_p7 = scmp.lt.s32.totalorder %s682_s15, 1  ;;  %vm346_vm2 = vcmask 785408  }
  0x55   : > { %v502_v5 = vpack.c.bf16 %v262_v3, %v261_v2  ;;  %v505_v7 = vpack.c.bf16 %v264_v6, %v263_v4  ;;  %v260_v8 = vld [vmem:[%s212_s6] sm:$0xff] }
  0x56   : > { %s901_s15 = smov (!%p250_p7, %s682_s15), 1  ;;  %v481_v9 = vld [vmem:[%s879_s2] ss:$0 sm:$0xff] }
  0x57   : > { %503 = vmatpush3.bf16.msra.mxu0 %v502_v5  ;;  %s480_s19 = sshll.u32 %s901_s15, 3 }
  0x58   : > { %504 = vmatprep.subr.bf16.mxu0 %v696_v0  ;;  %s259_s4 = scalar_lea.vmem %s880_s3, %s480_s19 }
  0x5b   : > { %506 = vmatpush3.bf16.msra.mxu0 %v505_v7 }
  0x5e   : > { %499 = vmatmul.mubr.msk.f32.vlgmr.msra.gmra.mrb[0].mxu0 %vm272_vm1, %v260_v8 }
 0x131   : > { %v342_v10 = vpop.f32.mrb[0].mxu0 }
 0x132   : > { %v343_v11 = vadd.f32 %v481_v9, %v342_v10  ;;  %v500_v12 = vpop.f32.mrb[1].mxu0 }
 0x134   : > { %347 = vst.msk [vmem:[%s259_s4] sm:$0xff] %vm346_vm2, %v343_v11 }
 0x135 PF: > { %s17_s17 = sadd.s32 1, %s690_s17   ;;  %s893_s12 = smov %s674_s13 }
 0x136   : > { %p14_p1 = scmp.ge.s32.totalorder %s17_s17, 4   ;;  %s894_s13 = smov %s678_s14 }
 0x137   : > { %s895_s14 = smov %s802_s27  ;;  %s896_s15 = smov %s686_s16 }
 0x138   : > { %s897_s16 = smov %s899_s25  ;;  %16 = sbr.rel (!%p14_p1) target bundleno = 5 (0x5), region = 80 }
 0x13f   :  { %379 = vsyncpa [#allocation3], 1 }
 0x140   :  { %381 = vsyncpa [#allocation3 + $0x1], 1 }
 0x141   :  { %382 = vsyncpa [#allocation5], 1 }

// kernel: causal_self_attention.5
= control target key start
LH: loop header
LB: loop body
LE: loop exit
PB: predicated region body
PF: predicated region fallthrough
CT: control target
= control target key end

     0   :  { %8 = vsyncpa [#allocation3], 0  ;;  %s762_s0 = inlined_call_operand.vmem [shape: f32[2,8,32], index: 0, kind: input, shape index: {}]   ;;  %s763_s1 = inlined_call_operand.vmem [shape: f32[32,32], index: 1, kind: input, shape index: {}]   ;;  %s764_s2 = inlined_call_operand.vmem [shape: f32[1,32], index: 2, kind: input, shape index: {}]   ;;  %s765_s3 = inlined_call_operand.hbm [shape: f32[2,8,32], index: 3, kind: output, shape index: {}]  }
   0x1   :  { %10 = vsyncpa [#allocation3 + $0x1], 0  ;;  %s635_s12 = smov 0   ;;  %s637_s13 = smov 0  }
   0x2   :  { %s639_s14 = smov 0   ;;  %s641_s15 = smov 0  }
   0x3   :  { %s643_s16 = smov 0   ;;  %s645_s17 = smov 0  }
   0x4 LB: > { %s436_s18 = sadd.s32 4294967295, %s609_s17   ;;  %s437_s19 = sadd.s32 4294967294, %s609_s17   ;;  %s609_s17 = sphi %s645_s17, %s16_s17   ;;  %s605_s16 = sphi %s643_s16, %s772_s16   ;;  %s601_s15 = sphi %s641_s15, %s771_s15   ;;  %s597_s14 = sphi %s639_s14, %s770_s14   ;;  %s593_s13 = sphi %s637_s13, %s769_s13   ;;  %s589_s12 = sphi %s635_s12, %s768_s12  }
   0x5   : > { %s35_s20 = sadd.s32 1, %s605_s16  ;;  %s126_s21 = sadd.s32 1, %s597_s14 }
   0x6   : > { %p37_p0 = scmp.ge.s32.totalorder %s35_s20, 2  ;;  %p136_p1 = scmp.ne.s32.totalorder %s597_s14, %s593_s13 }
   0x7   : > { %p137_p2 = scmp.eq.s32.totalorder %s436_s18, 1  ;;  %p142_p3 = scmp.ne.s32.totalorder %s593_s13, %s589_s12 }
   0x8   : > { %s774_s20 = smov (%p37_p0, %s35_s20), 0  ;;  %p143_p5 = scmp.eq.s32.totalorder %s437_s19, 1 }
   0x9   : > { %p675_p4 = por %p137_p2, %p136_p1  ;;  %s119_s23 = ssub.s32 %s605_s16, %s774_s20 }
   0xa   : > { %p442_p6 = scmp.ge.s32.totalorder %s609_s17, 1  ;;  %p124_p7 = scmp.eq.s32.totalorder %s119_s23, 0 }
   0xb   : > { %p682_p8 = por %p143_p5, %p142_p3  ;;  %p184_p9 = scmp.lt.s32.totalorder %s609_s17, 3 }
   0xc   : > { %s688_s25 = scalar_select %p124_p7, %s597_s14, %s126_s21  }
   0xd   : > { %p185_p10 = pnand %p442_p6, %p184_p9 }
   0xe   : > { %v232_v0 = vld [vmem:[%s763_s1] sm:$0xff] (!%p185_p10)  ;;  %v233_v1 = vld [vmem:[%s763_s1 + $0x8] sm:$0xff] (!%p185_p10)  ;;  %v234_v2 = vld [vmem:[%s763_s1 + $0x10] sm:$0xff] (!%p185_p10)  ;;  %v611_v3 = vmov (!%p185_p10), 0.0|0.0   ;;  %vm612_vm0 = vmmov (!%p185_p10), 0   ;;  %v613_v6 = vmov (!%p185_p10), 0.0  }
   0xf   : > { %188 = sbr.rel (%p185_p10) target bundleno = 255 (0xff), region = 32  ;;  %467 = vmatprep.subr.bf16.mxu0 (!%p185_p10), %v611_v3  ;;  %v468_v4 = vpack.c.bf16 (!%p185_p10), %v233_v1, %v232_v0  ;;  %v235_v5 = vld [vmem:[%s763_s1 + $0x18] sm:$0xff] (!%p185_p10)  ;;  %464 = vmatprep.mubr.msk.f32.mxu0 (!%p185_p10), %vm612_vm0, %v613_v6  ;;  %p217_p11 = scmp.lt.s32.totalorder (!%p185_p10), %s601_s15, 1  ;;  %vm243_vm1 = vcmask (!%p185_p10), 261120   ;;  %v445_v9 = vld [vmem:[%s764_s2] ss:$0 sm:$0xff] (!%p185_p10) }
  0x10   : > { %v471_v7 = vpack.c.bf16 (!%p185_p10), %v235_v5, %v234_v2  ;;  %s214_s18 = sand.u32 (!%p185_p10), 1, %s593_s13   ;;  %s448_s26 = sshll.u32 (!%p185_p10), %s601_s15, 7 }
  0x11   : > { %469 = vmatpush3.bf16.msra.mxu0 (!%p185_p10), %v468_v4  ;;  %s443_s19 = sshll.u32 (!%p185_p10), %s214_s18, 3  ;;  %s715_s4 = scalar_lea.hbm (!%p185_p10), %s765_s3, %s448_s26 }
  0x12   : > { %470 = vmatprep.subr.bf16.mxu0 (!%p185_p10), %v611_v3  ;;  %s216_s27 = scalar_lea.vmem (!%p185_p10), [#allocation2], %s443_s19  ;;  %s319_s5 = scalar_lea.sflag (!%p185_p10), [#allocation3], %s214_s18 }
  0x13   : > { %s334_s28 = sshll.u32 (!%p185_p10), %s216_s27, 4  ;;  %s717_s28 = int_to_ptr.vmem [resolvable:$true] %s334_s28 }
  0x14   : > { %s531_s6 = scalar_lea.vmem (!%p185_p10), %s717_s28, 128 }
  0x15   : > { %472 = vmatpush3.bf16.msra.mxu0 (!%p185_p10), %v471_v7  ;;  %p532_p12 = scmp.ne.s32.totalorder (!%p185_p10), %s717_s28, %s531_s6 }
  0x16   : > { %s218_s7 = scalar_select %p217_p11, %s601_s15, 1 }
  0x17   : > { %p533_p13 = pnand %p532_p12, %p675_p4  ;;  %s614_s15 = smov [#allocation2]  }
  0x18   : > { %s444_s8 = sshll.u32 %s218_s7, 3  ;;  %s535_s7 = sshll.u32 %s614_s15, 4  ;;  %s536_s7 = int_to_ptr.vmem [resolvable:$false] %s535_s7 }
  0x19   : > { %s223_s11 = scalar_lea.vmem %s762_s0, %s444_s8  ;;  %p534_p0 = pneg %p533_p13 }
  0x1a   : > { %v231_v8 = vld [vmem:[%s223_s11] sm:$0xff]  ;;  %s537_s8 = scalar_lea.vmem %s536_s7, 256  ;;  %p538_p1 = scmp.lt.s32.totalorder %s717_s28, %s536_s7 }
  0x1b   : > { %465 = vmatmul.mubr.msk.f32.vlgmr.msra.gmra.mrb[0].mxu0 %vm243_vm1, %v231_v8  ;;  %p539_p2 = scmp.lt.s32.totalorder %s537_s8, %s531_s6 }
  0x1d   : > { %p540_p3 = por %p539_p2, %p538_p1 }
  0x1f   : > { %p541_p5 = pnand %p540_p3, %p534_p0 }
  0xee   : > { %v313_v10 = vpop.f32.mrb[0].mxu0 }
  0xef   : > { %v314_v11 = vadd.f32 %v445_v9, %v313_v10  ;;  %v466_v12 = vpop.f32.mrb[1].mxu0 }
  0xf1   : > { %317 = vst.msk [vmem:[%s216_s27] sm:$0xff] %vm243_vm1, %v314_v11 }
  0xf2   : > { %544 = shalt.err (!%p541_p5)
}
  0xf3   : > { %s545_s9 = scalar_lea.hbm %s715_s4, 128  ;;  %s549_s18 = scalar_lea.hbm %s765_s3, 256 }
  0xf4   : > { %p546_p6 = scmp.ne.s32.totalorder %s715_s4, %s545_s9  ;;  %p550_p10 = scmp.lt.u32.totalorder %s715_s4, %s765_s3 }
  0xf5   : > { %p551_p11 = scmp.lt.u32.totalorder %s549_s18, %s545_s9  ;;  %p553_p13 = scmp.lt.u32.totalorder %s545_s9, %s715_s4 }
  0xf6   : > { %p547_p7 = pnand %p546_p6, %p675_p4 }
  0xf7   : > { %p552_p12 = por %p551_p11, %p550_p10 }
  0xf8   : > { %p548_p9 = pneg %p547_p7 }
  0xf9   : > { %p554_p0 = por %p553_p13, %p552_p12 }
  0xfb   : > { %p555_p1 = pnand %p554_p0, %p548_p9 }
  0xfd   : > { %558 = shalt.err (!%p555_p1)
}
  0xfe   : > { %473 = dma.vmem_to_hbm [thread:$0]  (%p675_p4), %s717_s28, 128, %s715_s4, %s319_s5  }
  0xff PF: > { %p479_p2 = scmp.ge.s32.totalorder %s609_s17, 2  ;;  %s346_s23 = sand.u32 1, %s589_s12  }
 0x100   : > { %s347_s26 = scalar_lea.sflag [#allocation3], %s346_s23 }
 0x101   : > { %p476_p3 = pnand %p479_p2, %p682_p8 }
 0x103   : > { %584 = dma.done.wait (!%p476_p3), %s347_s26, 128  }
 0x104   : > { %586 = vsyncadd (!%p476_p3), %s347_s26, 4294967168  ;;  %s16_s17 = sadd.s32 1, %s609_s17   ;;  %s768_s12 = smov %s593_s13 }
 0x105   : > { %p13_p5 = scmp.ge.s32.totalorder %s16_s17, 4   ;;  %s769_s13 = smov %s597_s14 }
 0x106   : > { %s770_s14 = smov %s688_s25  ;;  %s771_s15 = smov %s605_s16 }
 0x107   : > { %s772_s16 = smov %s774_s20  ;;  %15 = sbr.rel (!%p13_p5) target bundleno = 4 (0x4), region = 73 }
 0x10e   :  { %352 = vsyncpa [#allocation3], 1 }
 0x10f   :  { %354 = vsyncpa [#allocation3 + $0x1], 1 }

// kernel: causal_self_attention.4
= control target key start
LH: loop header
LB: loop body
LE: loop exit
PB: predicated region body
PF: predicated region fallthrough
CT: control target
= control target key end

     0   :  { %s1041_s12 = smov 0   ;;  %s1043_s13 = smov 0   ;;  %s1116_s0 = inlined_call_operand.vmem [shape: f32[2,4,8,8], index: 0, kind: input, shape index: {}]   ;;  %s1117_s1 = inlined_call_operand.vmem [shape: f32[2,4,8,8], index: 1, kind: input, shape index: {}]   ;;  %s1118_s2 = inlined_call_operand.vmem [shape: f32[2,4,8,8], index: 2, kind: input, shape index: {}]   ;;  %s1119_s3 = inlined_call_operand.vmem [shape: f32[2,4,8,8], index: 3, kind: output, shape index: {}]  }
   0x1   :  { %s1045_s14 = smov 0   ;;  %s1047_s15 = smov 0  }
   0x2   :  { %s1049_s16 = smov 0  }
   0x3 LB: > { %s35_s17 = sadd.s32 1, %s1007_s14  ;;  %s39_s18 = sadd.s32 1, %s1011_s15  ;;  %s1015_s16 = sphi %s1049_s16, %s13_s16   ;;  %s1011_s15 = sphi %s1047_s15, %s1123_s15   ;;  %s1007_s14 = sphi %s1045_s14, %s1122_s14   ;;  %s1003_s13 = sphi %s1043_s13, %s1121_s13   ;;  %s999_s12 = sphi %s1041_s12, %s1120_s12  }
   0x4   : > { %p37_p0 = scmp.ge.s32.totalorder %s35_s17, 4  ;;  %p894_p1 = scmp.ge.s32.totalorder %s1015_s16, 1 }
   0x5   : > { %p217_p2 = scmp.lt.s32.totalorder %s1015_s16, 9 }
   0x6   : > { %s1125_s17 = smov (%p37_p0, %s35_s17), 0  ;;  %s1127_s18 = smov (!%p37_p0, %s39_s18), %s1011_s15 }
   0x7   : > { %p218_p3 = pnand %p894_p1, %p217_p2  ;;  %p41_p4 = scmp.ge.s32.totalorder %s1127_s18, 2 }
   0x8   : > { %p275_p5 = scmp.lt.s32.totalorder (!%p218_p3), %s1003_s13, 1  ;;  %p277_p6 = scmp.lt.s32.totalorder (!%p218_p3), %s999_s12, 3  ;;  %vm326_vm0 = vcmask (!%p218_p3), 64512   ;;  %v1017_v0 = vmov (!%p218_p3), 0.0   ;;  %vm1018_vm1 = vmmov (!%p218_p3), 0   ;;  %vm323_vm2 = vcmask (!%p218_p3), 7168  }
   0x9   : > { %s1129_s18 = smov (%p41_p4, %s1127_s18), 0  ;;  %221 = sbr.rel (%p218_p3) target bundleno = 821 (0x335), region = 32 }
   0xa   : > { %915 = vmatprep.subr.mxu0 (!%p218_p3), %v1017_v0  ;;  %327 = vst.msk [vmem:[#allocation4] sm:$0xff] (!%p218_p3), %vm326_vm0, %v1017_v0  ;;  %917 = vmatprep.mubr.msk.f32.mxu0 (!%p218_p3), %vm1018_vm1, %v1017_v0  ;;  %v1019_v4 = vmov (!%p218_p3), -1e+30   ;;  %v611_v5 = vlaneseq (!%p218_p3)  ;;  %v1020_v12 = vmov (!%p218_p3), 0  }
   0xb   : > { %920 = vmatprep.subr.mxu1 (!%p218_p3), %v1017_v0  ;;  %922 = vmatprep.mubr.msk.f32.mxu1 (!%p218_p3), %vm1018_vm1, %v1017_v0  ;;  %324 = vst.msk [vmem:[#allocation2] sm:$0xff] (!%p218_p3), %vm323_vm2, %v1019_v4  ;;  %325 = vst.msk [vmem:[#allocation3] sm:$0xff] (!%p218_p3), %vm323_vm2, %v1017_v0 }
   0xc   : > { %v612_v6 = vshrl.u32 (!%p218_p3), %v611_v5, 7  ;;  %v616_v7 = vand.u32 (!%p218_p3), 127, %v611_v5  ;;  %969 = vset.pattern.permute.xlu0 (!%p218_p3), %v1020_v12  ;;  %970 = vset.pattern.permute.xlu1 (!%p218_p3), %v1020_v12 }
   0xe   : > { %vm619_vm3 = vcmp.le.s32.totalorder (!%p218_p3), %v616_v7, %v612_v6 }
  0x10   : > { %s1131_s13 = smov (!%p275_p5, %s1003_s13), 1  ;;  %s1133_s12 = smov (!%p277_p6, %s999_s12), 3 }
  0x11   : > { %s895_s19 = sshll.u32 %s1131_s13, 2  ;;  %v646_v31 = vld [vmem:[#allocation4] sm:$0xff] }
  0x12   : > { %s283_s20 = sadd.s32 %s895_s19, %s1133_s12  ;;  %v622_v13 = vld [vmem:[#allocation2] sm:$0xff]  ;;  %v638_v25 = vld [vmem:[#allocation3] sm:$0xff] }
  0x13   : > { %s1072_s21 = sshll.u32 %s283_s20, 3 }
  0x14   : > { %s296_s24 = scalar_lea.vmem %s1117_s1, %s1072_s21  ;;  %s285_s27 = scalar_lea.vmem %s1116_s0, %s1072_s21 }
  0x15   : > { %v533_v1 = vld [vmem:[%s296_s24] sm:$0xff]  ;;  %s307_s30 = scalar_lea.vmem %s1118_s2, %s1072_s21  ;;  %s318_s6 = scalar_lea.vmem %s1119_s3, %s1072_s21 }
  0x16   : > { %v531_v2 = vld [vmem:[%s285_s27] sm:$0xff]  ;;  %916 = vmatpush3.xpose.msk.msra.mxu0 %vm326_vm0, %v533_v1 }
  0x17   : > { %v532_v3 = vmul.f32 0.35355338, %v531_v2  ;;  %v621_v17 = vld [vmem:[%s307_s30] sm:$0xff] }
  0x18   : > { %921 = vmatpush3.msra.mxu1 %v621_v17 }
  0x19   : > { %918 = vmatmul.mubr.msk.f32.vlgmr.msra.gmra.mrb[0].mxu0 %vm326_vm0, %v532_v3 }
  0xec   : > { %v607_v8 = vpop.f32.mrb[0].mxu0 }
  0xed   : > { %v620_v9 = vsel %vm619_vm3, %v607_v8, -1e+30  ;;  %v919_v10 = vpop.f32.mrb[1].mxu0 }
  0xee   : > { %v623_v11 = vsel %vm326_vm0, %v620_v9, -inf }
  0xef   : > { %624 = vmax.xlane.f32.xlu0 %v623_v11 }
 0x17c   : > { %v625_v14 = vpop.xlane.xlu0 %624 }
 0x17d   : > { %v626_v15 = vmax.f32 %v622_v13, %v625_v14 }
 0x17f   : > { %v627_v16 = vsub.f32 %v622_v13, %v626_v15  ;;  %728 = vst.msk [vmem:[#allocation2] sm:$0xff] %vm323_vm2, %v626_v15  ;;  %632 = vperm.xlu0 %969, %v626_v15  }
 0x181   : > { %v628_v23 = vmul.f32 1.442695, %v627_v16 }
 0x1fe   : > { %v633_v18 = vpop.permute.xlu0 %632 }
 0x1ff   : > { %v635_v19 = vsub.f32 %v620_v9, %v633_v18 }
 0x201   : > { %v636_v20 = vmul.f32 1.442695, %v635_v19 }
 0x203   : > { %971 = vpow2.f32 %v636_v20 }
 0x204   : > { %973 = vpow2.f32 %v628_v23 }
 0x20d   : > { %v972_v21 = vpop.eup %971 }
 0x20e   : > { %923 = vmatmul.mubr.msk.f32.vlgmr.msra.gmra.mrb[0].mxu1 %vm326_vm0, %v972_v21  ;;  %v640_v22 = vsel %vm326_vm0, %v972_v21, 0.0  ;;  %v974_v24 = vpop.eup %973 }
 0x20f   : > { %641 = vadd.xlane.f32.xlu1 %v640_v22  ;;  %v639_v26 = vmul.f32 %v974_v24, %v638_v25 }
 0x220   : > { %649 = vperm.xlu1 %970, %v974_v24  }
 0x29c   : > { %v642_v27 = vpop.xlane.xlu1 %641 }
 0x29d   : > { %v643_v28 = vadd.f32 %v642_v27, %v639_v26 }
 0x29f   : > { %645 = vst.msk [vmem:[#allocation3] sm:$0xff] %vm323_vm2, %v643_v28 }
 0x2a0   : > { %v650_v32 = vpop.permute.xlu1 %649 }
 0x2a1   : > { %v652_v33 = vmul.f32 %v650_v32, %v646_v31 }
 0x2a6   : > { %v732_v29 = vld [vmem:[#allocation3] sm:$0xff] }
 0x2a7   : > { %975 = vrcp.f32 %v732_v29 }
 0x2b1   : > { %v976_v30 = vpop.eup %975 }
 0x2b2   : > { %737 = vperm.xlu1 %970, %v976_v30  }
 0x2e1   : > { %v722_v34 = vpop.f32.mrb[0].mxu1 }
 0x2e2   : > { %v726_v35 = vadd.f32 %v722_v34, %v652_v33  ;;  %v924_v36 = vpop.f32.mrb[1].mxu1 }
 0x2e4   : > { %727 = vst.msk [vmem:[#allocation4] sm:$0xff] %vm326_vm0, %v726_v35 }
 0x2eb   : > { %v734_v37 = vld [vmem:[#allocation4] sm:$0xff] }
 0x331   : > { %v738_v38 = vpop.permute.xlu1 %737 }
 0x332   : > { %v740_v39 = vmul.f32 %v738_v38, %v734_v37 }
 0x334   : > { %742 = vst.msk [vmem:[%s318_s6] sm:$0xff] %vm326_vm0, %v740_v39 }
 0x335 PF: > { %s13_s16 = sadd.s32 1, %s1015_s16   ;;  %s1120_s12 = smov %s1007_s14 }
 0x336   : > { %p10_p7 = scmp.ge.s32.totalorder %s13_s16, 10   ;;  %s1121_s13 = smov %s1011_s15 }
 0x337   : > { %s1122_s14 = smov %s1125_s17  ;;  %s1123_s15 = smov %s1129_s18 }
 0x338   :  { %12 = sbr.rel (!%p10_p7) target bundleno = 3 (0x3), region = 84 }

</bundles_post_ra>
